<compile_context>
chip_gen: v6e
topology: v6e:2x2x1
jax: 0.10.0
libtpu: 0.0.40
codegen_flags: <defaults>
</compile_context>

<pallas_src>
import math
import numpy as np
import jax
import jax.numpy as jnp
from jax import lax
from jax.experimental import pallas as pl
from jax.experimental.pallas import tpu as pltpu


# ----------------------------------------------------------------------------
# small helpers
# ----------------------------------------------------------------------------
def _round_up(x, m):
    return ((x + m - 1) // m) * m


def _vmem_budgets():
    """Generation-aware (vmem_limit_bytes, per-step working-set budget)."""
    cap = None
    try:
        info = pltpu.get_tpu_info()
        cap = int(getattr(info, "vmem_capacity_bytes", 0)) or None
    except Exception:
        cap = None
    if cap is None:
        cap = 64 * 1024 * 1024                  # conservative default (v7x per-TC)
    limit = min(int(cap * 0.75), cap - (16 << 20))   # 64MiB->48MiB, 128MiB->96MiB
    limit = max(limit, 32 << 20)
    return limit, limit // 2


def _wigner_d(l, beta):
    """Wigner small-d matrix d^l_{m',m}(beta); rows/cols centered m = -l..l.

    Uses log-gamma sums instead of raw factorial products, so it stays finite
    for moderately large l (the factorial form overflows around l ~ 40).
    """
    d = np.zeros((2 * l + 1, 2 * l + 1), dtype=np.float64)
    cb = math.cos(beta / 2.0)
    sb = math.sin(beta / 2.0)
    for i, mp in enumerate(range(-l, l + 1)):
        for j, m in enumerate(range(-l, l + 1)):
            logpref = 0.5 * (math.lgamma(l + mp + 1) + math.lgamma(l - mp + 1) +
                             math.lgamma(l + m + 1) + math.lgamma(l - m + 1))
            kmin = max(0, m - mp)
            kmax = min(l + m, l - mp)
            s = 0.0
            for k in range(kmin, kmax + 1):
                logden = (math.lgamma(l + m - k + 1) + math.lgamma(k + 1) +
                          math.lgamma(mp - m + k + 1) + math.lgamma(l - mp - k + 1))
                term = (-1.0) ** (mp - m + k) * math.exp(logpref - logden)
                term *= cb ** (2 * l + m - mp - 2 * k)
                term *= sb ** (mp - m + 2 * k)
                s += term
            d[i, j] = s
    return d


def _s3_quadrature_weights(b):
    """SOFT grid quadrature weights (lie_learn S3.quadrature_weights)."""
    k = np.arange(b)
    w = np.array([(2.0 / b) * math.sin(math.pi * (2 * j + 1) / (4.0 * b)) *
                  np.sum(np.sin((2 * j + 1) * (2 * k + 1) * math.pi / (4.0 * b)) /
                         (2 * k + 1))
                  for j in range(2 * b)])
    w *= 1.0 / (2.0 * b) ** 2
    return w


# ----------------------------------------------------------------------------
# Pallas kernel 1: S2_mm — per-degree complex matmul  z_l = a_l @ conj(b_l)
#
#   ar/ai: [L, M, K]    br/bi: [L, K, N]    ->   zr/zi: [L, M, N]  (float32)
#
#   zr = ar@br + ai@bi        zi = ai@br - ar@bi
#
# Grid = (degree-chunks, M tiles, N tiles); N tiles are lane-dense multiples of
# 128; rhs is NOT duplicated (half the B traffic vs the stacked-K form); MXU
# operands may be bf16 but accumulation is always f32.
# ----------------------------------------------------------------------------
def _complex_mm_pallas(ar, ai, br, bi, *, mm_dtype=jnp.float32):
    L, M, K = ar.shape
    N = br.shape[2]

    itemsize = jnp.dtype(mm_dtype).itemsize
    row_mult = 8 if itemsize >= 4 else 16        # sublane packing for bf16
    Kp = _round_up(K, row_mult)

    vmem_limit, step_budget = _vmem_budgets()

    def step_bytes(lc, tm, tn):
        a = 2 * lc * tm * Kp * itemsize          # ar + ai blocks
        b = 2 * lc * Kp * tn * itemsize          # br + bi blocks
        o = 2 * lc * tm * tn * 4                 # zr + zi blocks (f32)
        return 2 * (a + b + o)                   # double-buffered

    # tile choice: lane-dense N tiles (>=256 where possible, fills the 256-wide
    # MXU in N), then the largest M tile that fits, then grow degrees per step.
    n_full = _round_up(N, 128)
    tn_candidates = [n_full] if n_full <= 512 else [512, 384, 256, 128]
    m_full = _round_up(M, row_mult)
    tm_candidates = [m_full] if m_full <= 1024 else [1024, 512, 256, 128]

    TN = tn_candidates[-1]
    for tn in tn_candidates:
        if step_bytes(1, tm_candidates[-1], tn) <= step_budget:
            TN = tn
            break
    TM = tm_candidates[-1]
    for tm in tm_candidates:
        if step_bytes(1, tm, TN) <= step_budget:
            TM = tm
            break

    Mp = _round_up(M, TM)
    Np = _round_up(N, TN)

    def total_steps(lc):
        return pl.cdiv(L, lc) * (Mp // TM) * (Np // TN)

    Lc = 1
    while (Lc * 2 <= min(L, 8)
           and step_bytes(Lc * 2, TM, TN) <= step_budget
           and total_steps(Lc * 2) >= 4):        # keep >=2 grid steps per TC (v7x)
        Lc *= 2
    Lp = _round_up(L, Lc)

    def padcast(x, shape):
        pads = [(0, s - d) for d, s in zip(x.shape, shape)]
        return jnp.pad(x, pads).astype(mm_dtype)

    Ar = padcast(ar, (Lp, Mp, Kp))
    Ai = padcast(ai, (Lp, Mp, Kp))
    Br = padcast(br, (Lp, Kp, Np))
    Bi = padcast(bi, (Lp, Kp, Np))

    def kernel(ar_ref, ai_ref, br_ref, bi_ref, zr_ref, zi_ref):
        for j in range(Lc):                      # small static unroll over degrees
            a_r, a_i = ar_ref[j], ai_ref[j]
            b_r, b_i = br_ref[j], bi_ref[j]
            zr_ref[j] = (jnp.dot(a_r, b_r, preferred_element_type=jnp.float32) +
                         jnp.dot(a_i, b_i, preferred_element_type=jnp.float32))
            zi_ref[j] = (jnp.dot(a_i, b_r, preferred_element_type=jnp.float32) -
                         jnp.dot(a_r, b_i, preferred_element_type=jnp.float32))

    grid = (Lp // Lc, Mp // TM, Np // TN)
    a_spec = pl.BlockSpec((Lc, TM, Kp), lambda i, m, n: (i, m, 0))
    b_spec = pl.BlockSpec((Lc, Kp, TN), lambda i, m, n: (i, 0, n))
    z_spec = pl.BlockSpec((Lc, TM, TN), lambda i, m, n: (i, m, n))

    cost = pl.CostEstimate(
        flops=int(8 * Lp * Mp * Kp * Np),
        transcendentals=0,
        bytes_accessed=int(2 * Lp * Mp * Kp * itemsize + 2 * Lp * Kp * Np * itemsize
                           + 2 * Lp * Mp * Np * 4))

    zr, zi = pl.pallas_call(
        kernel,
        out_shape=(jax.ShapeDtypeStruct((Lp, Mp, Np), jnp.float32),
                   jax.ShapeDtypeStruct((Lp, Mp, Np), jnp.float32)),
        grid_spec=pltpu.PrefetchScalarGridSpec(
            num_scalar_prefetch=0, grid=grid,
            in_specs=[a_spec, a_spec, b_spec, b_spec],
            out_specs=[z_spec, z_spec]),
        compiler_params=pltpu.CompilerParams(
            dimension_semantics=("parallel", "parallel", "parallel"),
            vmem_limit_bytes=vmem_limit),
        cost_estimate=cost,
    )(Ar, Ai, Br, Bi)

    return zr[:L, :M, :N], zi[:L, :M, :N]


# ----------------------------------------------------------------------------
# Pallas kernel 2: SO3-IFFT Wigner synthesis (reduction over degree l)
#
#   dd: [L, BETA, MN]   z: [L, C, MN]   ->   out: [BETA, C, MN]
#   out[b, c, k] = sum_l dd[l, b, k] * z[l, c, k]
#
# MN (the flattened (m, n) index) lives on the lane axis -> contiguous DMA, no
# size-1 lane padding.  Grid = (MN tiles, C tiles); the dd block is reused
# across consecutive C steps; the l-reduction is a fori_loop carry and every
# output tile is stored exactly once.  Everything stays float32 (VPU math).
# ----------------------------------------------------------------------------
def _wigner_synthesis_pallas(dd, z):
    L, BETA, MN = dd.shape
    C = z.shape[1]

    vmem_limit, step_budget = _vmem_budgets()

    def step_bytes(tc, tk):
        dd_blk = L * BETA * tk * 4
        z_blk = L * tc * tk * 4
        o_blk = BETA * tc * tk * 4
        acc = BETA * tc * tk * 4                 # fori_loop carry
        return 2 * (dd_blk + z_blk + o_blk) + acc

    mn_full = _round_up(MN, 128)
    tk_candidates = [mn_full] if mn_full <= 512 else [512, 384, 256, 128]
    c_full = _round_up(C, 8)
    tc_candidates = [c_full] if c_full <= 128 else [128, 64, 32, 16, 8]

    TK = tk_candidates[-1]
    for tk in tk_candidates:
        if step_bytes(tc_candidates[-1], tk) <= step_budget:
            TK = tk
            break
    TC = tc_candidates[-1]
    for tc in tc_candidates:
        if (step_bytes(tc, TK) <= step_budget
                and BETA * tc * TK * 4 <= 2 * (1 << 20)):   # keep the carry small
            TC = tc
            break

    MNp = _round_up(MN, TK)
    Cp = _round_up(C, TC)

    dd_p = jnp.pad(dd.astype(jnp.float32), ((0, 0), (0, 0), (0, MNp - MN)))
    z_p = jnp.pad(z.astype(jnp.float32), ((0, 0), (0, Cp - C), (0, MNp - MN)))

    unroll_l = True if L <= 16 else 8            # partial unroll for large L

    def kernel(dd_ref, z_ref, o_ref):
        # dd_ref: [L, BETA, TK], z_ref: [L, TC, TK], o_ref: [BETA, TC, TK]
        def body(l, acc):
            return acc + dd_ref[l][:, None, :] * z_ref[l][None, :, :]
        acc0 = dd_ref[0][:, None, :] * z_ref[0][None, :, :]
        o_ref[...] = lax.fori_loop(1, L, body, acc0, unroll=unroll_l)

    grid = (MNp // TK, Cp // TC)                 # MN slow -> dd block reused over C
    dd_spec = pl.BlockSpec((L, BETA, TK), lambda t, c: (0, 0, t))
    z_spec = pl.BlockSpec((L, TC, TK), lambda t, c: (0, c, t))
    o_spec = pl.BlockSpec((BETA, TC, TK), lambda t, c: (0, c, t))

    cost = pl.CostEstimate(
        flops=int(2 * L * BETA * Cp * MNp),
        transcendentals=0,
        bytes_accessed=int(4 * (L * BETA * MNp + L * Cp * MNp + BETA * Cp * MNp)))

    out = pl.pallas_call(
        kernel,
        out_shape=jax.ShapeDtypeStruct((BETA, Cp, MNp), jnp.float32),
        grid_spec=pltpu.PrefetchScalarGridSpec(
            num_scalar_prefetch=0, grid=grid,
            in_specs=[dd_spec, z_spec], out_specs=o_spec),
        compiler_params=pltpu.CompilerParams(
            dimension_semantics=("parallel", "parallel"),
            vmem_limit_bytes=vmem_limit),
        cost_estimate=cost,
    )(dd_p, z_p)

    return out[:, :C, :MN]


# ----------------------------------------------------------------------------
# S2Convolution module (JAX / Pallas)
# ----------------------------------------------------------------------------
class S2ConvolutionPallas:
    def __init__(self, nfeature_in, nfeature_out, b_in, b_out, grid, key,
                 mm_dtype=jnp.bfloat16):
        self.nfeature_in = nfeature_in
        self.nfeature_out = nfeature_out
        self.b_in = b_in
        self.b_out = b_out
        self.grid = tuple(grid)                  # tuple of (alpha, beta)
        self.mm_dtype = mm_dtype                 # MXU operand dtype (f32 acc)
        ngrid = len(self.grid)

        # parameters (deterministic init, same shapes as the PyTorch module)
        self.kernel = jax.random.uniform(
            key, (nfeature_in, nfeature_out, ngrid),
            minval=-1.0, maxval=1.0, dtype=jnp.float32)
        self.scaling = 1.0 / math.sqrt(ngrid * nfeature_in * b_out ** 4.0 / b_in ** 2.0)
        self.bias = jnp.zeros((1, nfeature_out, 1, 1, 1), jnp.float32)

        M = 2 * b_out - 1
        c = b_out - 1

        # S2-FFT analysis weights: quadrature * d^l_{m,0}(beta_in)
        betas_in = (np.arange(2 * b_in) + 0.5) / (2 * b_in) * np.pi
        w_quad = _s3_quadrature_weights(b_in) * 2 * b_in
        W1 = np.zeros((b_out, M, 2 * b_in), np.float64)
        for l in range(b_out):
            for ib, bt in enumerate(betas_in):
                W1[l, c - l:c + l + 1, ib] = _wigner_d(l, bt)[:, l] * w_quad[ib]
        self._W1 = W1

        # s2_local_ft basis: D^l_{m,0}(alpha, beta, 0) at each grid point
        F = np.zeros((ngrid, b_out, M), np.complex128)
        for i, (alpha, beta) in enumerate(self.grid):
            for l in range(b_out):
                dcol = _wigner_d(l, beta)[:, l]
                ms = np.arange(-l, l + 1)
                F[i, l, c - l:c + l + 1] = np.exp(-1j * ms * alpha) * dcol
        self._F = F

        # SO3-IFFT synthesis weights, pre-shaped for the Pallas kernel as
        # [L, BETA, MN]  (MN = M*M flattened (m, n)):
        #   Dd[l, beta, m*M+n] = (2l+1) * d^l_{m,n}(beta_out)
        betas_out = (np.arange(2 * b_out) + 0.5) / (2 * b_out) * np.pi
        Dd = np.zeros((b_out, 2 * b_out, M * M), np.float64)
        for l in range(b_out):
            blk = np.zeros((2 * b_out, M, M))
            for ib, bt in enumerate(betas_out):
                blk[ib, c - l:c + l + 1, c - l:c + l + 1] = (2 * l + 1) * _wigner_d(l, bt)
            Dd[l] = blk.reshape(2 * b_out, M * M)
        self._Dd = Dd

    def __call__(self, x):
        # layout: x [batch, feature_in, beta, alpha]
        batch, fin, nbeta, nalpha = x.shape
        assert fin == self.nfeature_in
        assert nbeta == 2 * self.b_in and nalpha == 2 * self.b_in
        b_in, b_out = self.b_in, self.b_out
        fout = self.nfeature_out
        M = 2 * b_out - 1
        c = b_out - 1

        # ---- S2_fft_real (glue): FFT over alpha, Wigner/quadrature reduce over beta
        xf = jnp.fft.fft(x.astype(jnp.complex64), axis=-1)       # [batch, fin, beta, m_fft]
        fft_idx = jnp.asarray([(mi - c) % (2 * b_in) for mi in range(M)], dtype=jnp.int32)
        xfc = xf[..., fft_idx]                                   # centered m: [batch, fin, beta, M]
        W1 = jnp.asarray(self._W1, jnp.float32)
        Xc = jnp.einsum('lmb,zfbm->lmzf', W1, xfc)               # [L, M, batch, fin] complex
        Xr = jnp.real(Xc).reshape(b_out, M * batch, fin).astype(jnp.float32)
        Xi = jnp.imag(Xc).reshape(b_out, M * batch, fin).astype(jnp.float32)

        # ---- s2_local_ft (glue): kernel -> spectral, layout [L, fin, M*fout]
        Fbasis = jnp.asarray(self._F, jnp.complex64)             # [ngrid, L, M]
        kscaled = (self.kernel * self.scaling).astype(jnp.complex64)
        Yc = jnp.einsum('abi,ilm->lmab', kscaled, Fbasis)        # [L, M(=n), fin, fout]
        Yt = jnp.transpose(Yc, (0, 2, 1, 3)).reshape(b_out, fin, M * fout)
        Yr = jnp.real(Yt).astype(jnp.float32)
        Yi = jnp.imag(Yt).astype(jnp.float32)

        # ---- S2_mm (PALLAS): z_l = x_l @ conj(y_l)   (bf16 operands, f32 acc)
        Zr, Zi = _complex_mm_pallas(Xr, Xi, Yr, Yi, mm_dtype=self.mm_dtype)

        # re-layout [L, M*batch, M*fout] -> [L, batch*fout, M*M] (MN on lanes)
        # TODO(synk): fold this transpose into a fused S2_mm+synthesis kernel.
        def to_cz(Z):
            Z = Z.reshape(b_out, M, batch, M, fout)
            Z = jnp.transpose(Z, (0, 2, 4, 1, 3))                # [L, batch, fout, m, n]
            return Z.reshape(b_out, batch * fout, M * M)

        ZF = batch * fout
        Zk = jnp.concatenate([to_cz(Zr), to_cz(Zi)], axis=1)     # [L, 2*ZF, M*M]

        # ---- SO3_ifft_real, Wigner synthesis over l (PALLAS, f32 VPU math)
        Dd = jnp.asarray(self._Dd, jnp.float32)                  # [L, 2*b_out, M*M]
        O = _wigner_synthesis_pallas(Dd, Zk)                     # [2*b_out, 2*ZF, M*M]
        Or, Oi = O[:, :ZF, :], O[:, ZF:, :]

        # ---- SO3_ifft_real, spatial part (glue): scatter centered freqs + ifft2
        spec = (Or + 1j * Oi).reshape(2 * b_out, batch, fout, M, M)
        spec = jnp.transpose(spec, (1, 2, 0, 3, 4))              # [batch, fout, beta, m, n]
        freq = jnp.zeros((batch, fout, 2 * b_out, 2 * b_out, 2 * b_out), jnp.complex64)
        fm = (jnp.arange(M) - c) % (2 * b_out)
        freq = freq.at[:, :, :, fm[:, None], fm[None, :]].set(spec)
        out = jnp.fft.ifft2(freq, axes=(-2, -1)) * float((2 * b_out) ** 2)
        out = jnp.real(out).astype(jnp.float32)                  # [batch, fout, beta, alpha, gamma]

        # ---- bias
        return out + self.bias


# ----------------------------------------------------------------------------
if __name__ == "__main__":
    key = jax.random.PRNGKey(0)
    kx, kk, k1, k2, k3 = jax.random.split(key, 5)

    nfeature_in, nfeature_out = 4, 5
    b_in, b_out = 4, 3
    batch = 2

    # small deterministic "near identity" sphere grid of (alpha, beta) points
    n_alpha, n_beta, max_beta = 3, 2, math.pi / 8
    grid = tuple((2.0 * math.pi * a / n_alpha, max_beta * (j + 1) / n_beta)
                 for j in range(n_beta) for a in range(n_alpha))

    x = jax.random.normal(kx, (batch, nfeature_in, 2 * b_in, 2 * b_in), dtype=jnp.float32)

    # ---- standalone Pallas-kernel checks vs plain-JAX references (f32 path)
    L_, MZ_, FI_, NF_, MN_, BETA_, ZF_ = 3, 10, 4, 25, 25, 6, 20
    ar = jax.random.normal(k1, (L_, MZ_, FI_))
    ai = jax.random.normal(k2, (L_, MZ_, FI_))
    br = jax.random.normal(k3, (L_, FI_, NF_))
    bi = jax.random.normal(k1, (L_, FI_, NF_))
    zr, zi = _complex_mm_pallas(ar, ai, br, bi, mm_dtype=jnp.float32)
    zr_ref = jnp.einsum('lmf,lfn->lmn', ar, br) + jnp.einsum('lmf,lfn->lmn', ai, bi)
    zi_ref = jnp.einsum('lmf,lfn->lmn', ai, br) - jnp.einsum('lmf,lfn->lmn', ar, bi)
    assert jnp.allclose(zr, zr_ref, atol=2e-3, rtol=2e-3), "S2_mm real part mismatch"
    assert jnp.allclose(zi, zi_ref, atol=2e-3, rtol=2e-3), "S2_mm imag part mismatch"

    dd = jax.random.normal(k2, (L_, BETA_, MN_))
    zz = jax.random.normal(k3, (L_, ZF_, MN_))                   # [L, C, MN] layout
    o = _wigner_synthesis_pallas(dd, zz)
    o_ref = jnp.einsum('lbk,lzk->bzk', dd, zz)
    assert jnp.allclose(o, o_ref, atol=1e-3, rtol=1e-3), "Wigner synthesis mismatch"

    # ---- full module forward (bf16 MXU operands by default)
    conv = S2ConvolutionPallas(nfeature_in, nfeature_out, b_in, b_out, grid, key=kk)
    out = jax.block_until_ready(conv(x))
    assert out.shape == (batch, nfeature_out, 2 * b_out, 2 * b_out, 2 * b_out)
    assert out.dtype == jnp.float32

    # validate the bf16-operand matmul path against an f32 reference run with a
    # scale-relative max-error check (not a 10%-of-max tolerance).
    conv_f32 = S2ConvolutionPallas(nfeature_in, nfeature_out, b_in, b_out, grid,
                                   key=kk, mm_dtype=jnp.float32)
    out_f32 = jax.block_until_ready(conv_f32(x))
    scale = jnp.sqrt(jnp.mean(out_f32 ** 2)) + 1e-12
    rel_err = float(jnp.max(jnp.abs(out - out_f32)) / scale)
    assert rel_err < 5e-2, f"bf16 matmul path deviates from f32 reference (rel_err={rel_err})"

    print("KERNEL_OK")
</pallas_src>

<mosaic_0001>
module attributes {stable_mosaic.version = 11 : i64} {
  func.func @kernel(%arg0: i32, %arg1: i32, %arg2: i32, %arg3: memref<1x16x8xf32, #tpu.memory_space<vmem>>, %arg4: memref<1x16x8xf32, #tpu.memory_space<vmem>>, %arg5: memref<1x8x128xf32, #tpu.memory_space<vmem>>, %arg6: memref<1x8x128xf32, #tpu.memory_space<vmem>>, %arg7: memref<1x16x128xf32, #tpu.memory_space<vmem>>, %arg8: memref<1x16x128xf32, #tpu.memory_space<vmem>>) attributes {dimension_semantics = [#tpu.dimension_semantics<parallel>, #tpu.dimension_semantics<parallel>, #tpu.dimension_semantics<parallel>], iteration_bounds = array<i64: 3, 1, 1>, scalar_prefetch = 0 : i64, scratch_operands = 0 : i64, tpu.core_type = #tpu.core_type<tc>, window_params = [{transform_indices = @transform_0, window_bounds = array<i64: 1, 16, 8>}, {transform_indices = @transform_1, window_bounds = array<i64: 1, 16, 8>}, {transform_indices = @transform_2, window_bounds = array<i64: 1, 8, 128>}, {transform_indices = @transform_3, window_bounds = array<i64: 1, 8, 128>}, {transform_indices = @transform_4, window_bounds = array<i64: 1, 16, 128>}, {transform_indices = @transform_5, window_bounds = array<i64: 1, 16, 128>}]} {
    %c0 = arith.constant 0 : index
    %c0_0 = arith.constant 0 : index
    %c0_1 = arith.constant 0 : index
    %0 = vector.load %arg3[%c0, %c0_0, %c0_1] : memref<1x16x8xf32, #tpu.memory_space<vmem>>, vector<1x16x8xf32>
    %1 = vector.shape_cast %0 : vector<1x16x8xf32> to vector<16x8xf32>
    %c0_2 = arith.constant 0 : index
    %c0_3 = arith.constant 0 : index
    %c0_4 = arith.constant 0 : index
    %2 = vector.load %arg4[%c0_2, %c0_3, %c0_4] : memref<1x16x8xf32, #tpu.memory_space<vmem>>, vector<1x16x8xf32>
    %3 = vector.shape_cast %2 : vector<1x16x8xf32> to vector<16x8xf32>
    %c0_5 = arith.constant 0 : index
    %c0_6 = arith.constant 0 : index
    %c0_7 = arith.constant 0 : index
    %4 = vector.load %arg5[%c0_5, %c0_6, %c0_7] : memref<1x8x128xf32, #tpu.memory_space<vmem>>, vector<1x8x128xf32>
    %5 = vector.shape_cast %4 : vector<1x8x128xf32> to vector<8x128xf32>
    %c0_8 = arith.constant 0 : index
    %c0_9 = arith.constant 0 : index
    %c0_10 = arith.constant 0 : index
    %6 = vector.load %arg6[%c0_8, %c0_9, %c0_10] : memref<1x8x128xf32, #tpu.memory_space<vmem>>, vector<1x8x128xf32>
    %7 = vector.shape_cast %6 : vector<1x8x128xf32> to vector<8x128xf32>
    %cst = arith.constant dense<0.000000e+00> : vector<16x128xf32>
    %8 = tpu.matmul %1, %5, %cst {dimension_numbers = #tpu.dot_dimension_numbers<[1], [0], [0], [1], [0, 0, 1, 1], [], []>} : vector<16x8xf32>, vector<8x128xf32>, vector<16x128xf32> -> vector<16x128xf32>
    %cst_11 = arith.constant dense<0.000000e+00> : vector<16x128xf32>
    %9 = tpu.matmul %3, %7, %cst_11 {dimension_numbers = #tpu.dot_dimension_numbers<[1], [0], [0], [1], [0, 0, 1, 1], [], []>} : vector<16x8xf32>, vector<8x128xf32>, vector<16x128xf32> -> vector<16x128xf32>
    %10 = arith.addf %8, %9 : vector<16x128xf32>
    %c0_12 = arith.constant 0 : index
    %c0_13 = arith.constant 0 : index
    %c0_14 = arith.constant 0 : index
    %11 = vector.load %arg7[%c0_12, %c0_13, %c0_14] : memref<1x16x128xf32, #tpu.memory_space<vmem>>, vector<1x16x128xf32>
    %12 = vector.shape_cast %11 : vector<1x16x128xf32> to vector<16x128xf32>
    %13 = vector.shape_cast %10 : vector<16x128xf32> to vector<1x16x128xf32>
    tpu.vector_store %arg7[%c0_12, %c0_13, %c0_14], %13 {strides = array<i32>} : memref<1x16x128xf32, #tpu.memory_space<vmem>>, vector<1x16x128xf32>,
    %cst_15 = arith.constant dense<0.000000e+00> : vector<16x128xf32>
    %14 = tpu.matmul %3, %5, %cst_15 {dimension_numbers = #tpu.dot_dimension_numbers<[1], [0], [0], [1], [0, 0, 1, 1], [], []>} : vector<16x8xf32>, vector<8x128xf32>, vector<16x128xf32> -> vector<16x128xf32>
    %cst_16 = arith.constant dense<0.000000e+00> : vector<16x128xf32>
    %15 = tpu.matmul %1, %7, %cst_16 {dimension_numbers = #tpu.dot_dimension_numbers<[1], [0], [0], [1], [0, 0, 1, 1], [], []>} : vector<16x8xf32>, vector<8x128xf32>, vector<16x128xf32> -> vector<16x128xf32>
    %16 = arith.subf %14, %15 : vector<16x128xf32>
    %c0_17 = arith.constant 0 : index
    %c0_18 = arith.constant 0 : index
    %c0_19 = arith.constant 0 : index
    %17 = vector.load %arg8[%c0_17, %c0_18, %c0_19] : memref<1x16x128xf32, #tpu.memory_space<vmem>>, vector<1x16x128xf32>
    %18 = vector.shape_cast %17 : vector<1x16x128xf32> to vector<16x128xf32>
    %19 = vector.shape_cast %16 : vector<16x128xf32> to vector<1x16x128xf32>
    tpu.vector_store %arg8[%c0_17, %c0_18, %c0_19], %19 {strides = array<i32>} : memref<1x16x128xf32, #tpu.memory_space<vmem>>, vector<1x16x128xf32>,
    return
  }
  func.func @transform_0(%arg0: i32, %arg1: i32, %arg2: i32) -> (i32, i32, i32) {
    %c0_i32 = arith.constant 0 : i32
    %c0_i32_0 = arith.constant 0 : i32
    return %arg0, %arg1, %c0_i32 : i32, i32, i32
  }
  func.func @transform_1(%arg0: i32, %arg1: i32, %arg2: i32) -> (i32, i32, i32) {
    %c0_i32 = arith.constant 0 : i32
    %c0_i32_0 = arith.constant 0 : i32
    return %arg0, %arg1, %c0_i32 : i32, i32, i32
  }
  func.func @transform_2(%arg0: i32, %arg1: i32, %arg2: i32) -> (i32, i32, i32) {
    %c0_i32 = arith.constant 0 : i32
    %c0_i32_0 = arith.constant 0 : i32
    return %arg0, %c0_i32, %arg2 : i32, i32, i32
  }
  func.func @transform_3(%arg0: i32, %arg1: i32, %arg2: i32) -> (i32, i32, i32) {
    %c0_i32 = arith.constant 0 : i32
    %c0_i32_0 = arith.constant 0 : i32
    return %arg0, %c0_i32, %arg2 : i32, i32, i32
  }
  func.func @transform_4(%arg0: i32, %arg1: i32, %arg2: i32) -> (i32, i32, i32) {
    %c0_i32 = arith.constant 0 : i32
    return %arg0, %arg1, %arg2 : i32, i32, i32
  }
  func.func @transform_5(%arg0: i32, %arg1: i32, %arg2: i32) -> (i32, i32, i32) {
    %c0_i32 = arith.constant 0 : i32
    return %arg0, %arg1, %arg2 : i32, i32, i32
  }
}

</mosaic_0001>

<bundles_post_ra>
// kernel: tpu_custom_call.1
= control target key start
LH: loop header
LB: loop body
LE: loop exit
PB: predicated region body
PF: predicated region fallthrough
CT: control target
= control target key end

     0   :  { %11 = vsyncpa [#allocation3], 0  ;;  %s1352_s0 = inlined_call_operand.vmem [shape: f32[3,16,8], index: 0, kind: input, shape index: {}]   ;;  %s1353_s1 = inlined_call_operand.vmem [shape: f32[3,16,8], index: 1, kind: input, shape index: {}]   ;;  %s1354_s2 = inlined_call_operand.vmem [shape: f32[3,8,128], index: 2, kind: input, shape index: {}]   ;;  %s1355_s3 = inlined_call_operand.vmem [shape: f32[3,8,128], index: 3, kind: input, shape index: {}]   ;;  %s1356_s4 = inlined_call_operand.hbm [shape: f32[3,16,128], index: 4, kind: output, shape index: {0}]   ;;  %s1357_s5 = inlined_call_operand.hbm [shape: f32[3,16,128], index: 5, kind: output, shape index: {1}]  }
   0x1   :  { %13 = vsyncpa [#allocation3 + $0x1], 0 }
   0x2   :  { %14 = vsyncpa [#allocation5], 0 }
   0x3   :  { %16 = vsyncpa [#allocation5 + $0x1], 0  ;;  %s1173_s18 = smov 0   ;;  %s1175_s19 = smov 0  }
   0x4   :  { %s1177_s20 = smov 0   ;;  %s1179_s21 = smov 0  }
   0x5   :  { %s1181_s22 = smov 0   ;;  %s1183_s23 = smov 0  }
   0x6 LB: > { %s904_s24 = sadd.s32 4294967295, %s1137_s23   ;;  %s905_s25 = sadd.s32 4294967294, %s1137_s23   ;;  %s1137_s23 = sphi %s1183_s23, %s22_s23   ;;  %s1133_s22 = sphi %s1181_s22, %s1366_s22   ;;  %s1129_s21 = sphi %s1179_s21, %s1365_s21   ;;  %s1125_s20 = sphi %s1177_s20, %s1364_s20   ;;  %s1121_s19 = sphi %s1175_s19, %s1363_s19   ;;  %s1117_s18 = sphi %s1173_s18, %s1362_s18  }
   0x7   : > { %s41_s26 = sadd.s32 1, %s1133_s22  ;;  %s164_s27 = sadd.s32 1, %s1125_s20 }
   0x8   : > { %p43_p0 = scmp.ge.s32.totalorder %s41_s26, 3  ;;  %p174_p1 = scmp.ne.s32.totalorder %s1125_s20, %s1121_s19 }
   0x9   : > { %p175_p2 = scmp.eq.s32.totalorder %s904_s24, 2  ;;  %p180_p3 = scmp.ne.s32.totalorder %s1121_s19, %s1117_s18 }
   0xa   : > { %s1368_s26 = smov (%p43_p0, %s41_s26), 0  ;;  %p181_p5 = scmp.eq.s32.totalorder %s905_s25, 2 }
   0xb   : > { %p1213_p4 = por %p175_p2, %p174_p1  ;;  %s157_s29 = ssub.s32 %s1133_s22, %s1368_s26 }
   0xc   : > { %p908_p6 = scmp.ge.s32.totalorder %s1137_s23, 1  ;;  %p162_p7 = scmp.eq.s32.totalorder %s157_s29, 0 }
   0xd   : > { %p1220_p8 = por %p181_p5, %p180_p3  ;;  %p275_p9 = scmp.lt.s32.totalorder %s1137_s23, 4 }
   0xe   : > { %s1226_s6 = scalar_select %p162_p7, %s1125_s20, %s164_s27  }
   0xf   : > { %p276_p10 = pnand %p908_p6, %p275_p9 }
  0x10   : > { %p336_p11 = scmp.lt.s32.totalorder (!%p276_p10), %s1129_s21, 2  ;;  %s1358_s11 = sshll.u32 (!%p276_p10), %s1129_s21, 8 }
  0x11   : > { %279 = sbr.rel (%p276_p10) target bundleno = 266 (0x10a), region = 36  ;;  %s1262_s14 = scalar_lea.hbm (!%p276_p10), %s1356_s4, %s1358_s11 }
  0x12   : > { %s1139_s25 = smov (!%p276_p10), [#allocation2]  }
  0x13   : > { %s1035_s27 = sshll.u32 (!%p276_p10), %s1139_s25, 4  ;;  %s1036_s27 = int_to_ptr.vmem [resolvable:$false] %s1035_s27 }
  0x16   : > { %s337_s7 = scalar_select %p336_p11, %s1129_s21, 2  ;;  %vm377_vm0 = vcmask 64512  }
  0x18   : > { %s915_s8 = sshll.u32 %s337_s7, 3  ;;  %s933_s9 = sshll.u32 %s337_s7, 4 }
  0x19   : > { %s368_s12 = scalar_lea.vmem %s1355_s3, %s915_s8  ;;  %s361_s15 = scalar_lea.vmem %s1354_s2, %s915_s8 }
  0x1a   : > { %v376_v0 = vld [vmem:[%s368_s12] sm:$0xff]  ;;  %s353_s24 = scalar_lea.vmem %s1353_s1, %s933_s9  ;;  %s343_s29 = scalar_lea.vmem %s1352_s0, %s933_s9 }
  0x1b   : > { %v375_v1 = vld [vmem:[%s361_s15] sm:$0xff]  ;;  %949 = vmatprep.subr.mxu0 %v376_v0  ;;  %v374_v3 = vld [vmem:[%s353_s24 + $0x8] sm:$0xff]  ;;  %s1251_s7 = sand.u32 1, %s1121_s19  }
  0x1c   : > { %954 = vmatprep.subr.mxu1 %v375_v1  ;;  %v373_v2 = vld [vmem:[%s353_s24] sm:$0xff]  ;;  %950 = vmatpush3.msra.mxu0 %v376_v0  ;;  %v372_v5 = vld [vmem:[%s343_s29 + $0x8] sm:$0xff]  ;;  %s909_s8 = sshll.u32 %s1251_s7, 4  ;;  %s697_s17 = scalar_lea.sflag [#allocation3], %s1251_s7 }
  0x1d   : > { %v371_v4 = vld [vmem:[%s343_s29] sm:$0xff]  ;;  %951 = vmatprep.mubr.msk.f32.mxu0 %vm377_vm0, %v373_v2  ;;  %955 = vmatpush3.msra.mxu1 %v375_v1  ;;  %s327_s9 = scalar_lea.vmem [#allocation2], %s909_s8  ;;  %s1264_s15 = scalar_lea.vmem [#allocation4], %s909_s8 }
  0x1e   : > { %956 = vmatprep.mubr.msk.f32.mxu1 %vm377_vm0, %v371_v4  ;;  %952 = vmatmul.mubr.msk.f32.vlgmr.msra.gmra.mxu0 %vm377_vm0, %v374_v3  ;;  %s718_s10 = sshll.u32 %s327_s9, 4  ;;  %s737_s16 = sshll.u32 %s1264_s15, 4  ;;  %s1255_s10 = int_to_ptr.vmem [resolvable:$true] %s718_s10  ;;  %s1296_s16 = int_to_ptr.vmem [resolvable:$true] %s737_s16 }
  0x1f   : > { %957 = vmatmul.mubr.msk.f32.vlgmr.msra.gmra.mxu1 %vm377_vm0, %v372_v5  ;;  %959 = vmatprep.subr.mxu0 %v375_v1  ;;  %s1031_s24 = scalar_lea.vmem %s1255_s10, 256  ;;  %s1037_s29 = scalar_lea.vmem %s1036_s27, 512 }
  0x20   : > { %964 = vmatprep.subr.mxu1 %v376_v0  ;;  %960 = vmatpush3.msra.mxu0 %v375_v1  ;;  %p1032_p12 = scmp.ne.s32.totalorder %s1255_s10, %s1031_s24  ;;  %p1038_p1 = scmp.lt.s32.totalorder %s1255_s10, %s1036_s27 }
  0x21   : > { %965 = vmatpush3.msra.mxu1 %v376_v0  ;;  %961 = vmatprep.mubr.msk.f32.mxu0 %vm377_vm0, %v373_v2  ;;  %p1039_p2 = scmp.lt.s32.totalorder %s1037_s29, %s1031_s24 }
  0x22   : > { %966 = vmatprep.mubr.msk.f32.mxu1 %vm377_vm0, %v371_v4  ;;  %962 = vmatmul.mubr.msk.f32.vlgmr.msra.gmra.mxu0 %vm377_vm0, %v374_v3  ;;  %p1033_p13 = pnand %p1032_p12, %p1213_p4 }
  0x23   : > { %967 = vmatmul.mubr.msk.f32.vlgmr.msra.gmra.mxu1 %vm377_vm0, %v372_v5  ;;  %p1040_p3 = por %p1039_p2, %p1038_p1 }
  0x24   : > { %p1034_p0 = pneg %p1033_p13 }
  0x26   : > { %p1041_p5 = pnand %p1040_p3, %p1034_p0 }
  0xde   : > { %v953_v6 = vpop.f32.mrf.mxu0 }
  0xdf   : > { %v958_v7 = vpop.f32.mrf.mxu1 }
  0xe0   : > { %v537_v8 = vadd.f32 %v958_v7, %v953_v6  ;;  %v450_v9 = vpop.f32.mrf.mxu0 }
  0xe1   : > { %v531_v10 = vpop.f32.mrf.mxu1 }
  0xe2   : > { %541 = vst [vmem:[%s327_s9 + $0x8] sm:$0xff] %v537_v8  ;;  %v532_v11 = vadd.f32 %v531_v10, %v450_v9  ;;  %v963_v12 = vpop.f32.mrf.mxu0 }
  0xe3   : > { %v968_v13 = vpop.f32.mrf.mxu1 }
  0xe4   : > { %540 = vst [vmem:[%s327_s9] sm:$0xff] %v532_v11  ;;  %v693_v14 = vsub.f32 %v963_v12, %v968_v13  ;;  %v608_v15 = vpop.f32.mrf.mxu0 }
  0xe5   : > { %v683_v16 = vpop.f32.mrf.mxu1 }
  0xe6   : > { %1044 = shalt.err (!%p1041_p5)
}
  0xe7   : > { %s1045_s8 = scalar_lea.hbm %s1262_s14, 256  ;;  %s1049_s13 = scalar_lea.hbm %s1356_s4, 768 }
  0xe8   : > { %p1046_p6 = scmp.ne.s32.totalorder %s1262_s14, %s1045_s8  ;;  %p1050_p10 = scmp.lt.s32.totalorder %s1262_s14, %s1356_s4 }
  0xe9   : > { %p1051_p11 = scmp.lt.s32.totalorder %s1049_s13, %s1045_s8 }
  0xea   : > { %p1047_p7 = pnand %p1046_p6, %p1213_p4 }
  0xeb   : > { %p1052_p12 = por %p1051_p11, %p1050_p10 }
  0xec   : > { %p1048_p9 = pneg %p1047_p7 }
  0xee   : > { %p1053_p13 = pnand %p1052_p12, %p1048_p9 }
  0xf0   : > { %1056 = shalt.err (!%p1053_p13)
}
  0xf1   : > { %s1140_s24 = smov 128   ;;  %s1141_s27 = smov 8   ;;  %695 = vst [vmem:[%s1264_s15 + $0x8] sm:$0xff] %v693_v14  ;;  %v692_v17 = vsub.f32 %v608_v15, %v683_v16 }
  0xf2   : > { %969 = dma.vmem_to_hbm [thread:$0]  (%p1213_p4), %s1255_s10, 256, %s1262_s14, %s697_s17, %s1140_s24, %s1140_s24, %s1141_s27  }
  0xf3   : > { %s1361_s11 = sshll.u32 %s1129_s21, 8  ;;  %694 = vst [vmem:[%s1264_s15] sm:$0xff] %v692_v17  ;;  %s702_s12 = scalar_lea.sflag [#allocation5], %s1251_s7 }
  0xf4   : > { %s1303_s9 = scalar_lea.hbm %s1357_s5, %s1361_s11  ;;  %s1057_s13 = scalar_lea.vmem %s1296_s16, 256 }
  0xf5   : > { %p1058_p0 = scmp.ne.s32.totalorder %s1296_s16, %s1057_s13  ;;  %s1142_s10 = smov [#allocation4]  }
  0xf6   : > { %s1061_s14 = sshll.u32 %s1142_s10, 4  ;;  %s1062_s14 = int_to_ptr.vmem [resolvable:$false] %s1061_s14 }
  0xf7   : > { %p1059_p1 = pnand %p1058_p0, %p1213_p4  ;;  %s1063_s17 = scalar_lea.vmem %s1062_s14, 512 }
  0xf8   : > { %p1064_p3 = scmp.lt.s32.totalorder %s1296_s16, %s1062_s14  ;;  %p1065_p5 = scmp.lt.s32.totalorder %s1063_s17, %s1057_s13 }
  0xf9   : > { %p1060_p2 = pneg %p1059_p1 }
  0xfa   : > { %p1066_p6 = por %p1065_p5, %p1064_p3 }
  0xfc   : > { %p1067_p7 = pnand %p1066_p6, %p1060_p2 }
  0xfe   : > { %1070 = shalt.err (!%p1067_p7)
}
  0xff   : > { %s1071_s21 = scalar_lea.hbm %s1303_s9, 256  ;;  %s1075_s25 = scalar_lea.hbm %s1357_s5, 768 }
 0x100   : > { %p1072_p9 = scmp.ne.s32.totalorder %s1303_s9, %s1071_s21  ;;  %p1076_p12 = scmp.lt.s32.totalorder %s1303_s9, %s1357_s5 }
 0x101   : > { %p1077_p13 = scmp.lt.s32.totalorder %s1075_s25, %s1071_s21 }
 0x102   : > { %p1073_p10 = pnand %p1072_p9, %p1213_p4 }
 0x103   : > { %p1078_p0 = por %p1077_p13, %p1076_p12 }
 0x104   : > { %p1074_p11 = pneg %p1073_p10 }
 0x106   : > { %p1079_p1 = pnand %p1078_p0, %p1074_p11 }
 0x108   : > { %1082 = shalt.err (!%p1079_p1)
}
 0x109   : > { %970 = dma.vmem_to_hbm [thread:$0]  (%p1213_p4), %s1296_s16, 256, %s1303_s9, %s702_s12, %s1140_s24, %s1140_s24, %s1141_s27  }
 0x10a PF: > { %p980_p2 = scmp.ge.s32.totalorder %s1137_s23, 2  ;;  %s752_s8 = sand.u32 1, %s1117_s18  }
 0x10b   : > { %s753_s13 = scalar_lea.sflag [#allocation3], %s752_s8 }
 0x10c   : > { %p974_p3 = pnand %p980_p2, %p1220_p8 }
 0x10e   : > { %p975_p5 = pneg %p974_p3 }
 0x110   : > { %1108 = dma.done.wait (%p975_p5), %s753_s13, 256  }
 0x111   : > { %1110 = vsyncadd (%p975_p5), %s753_s13, 4294967040  ;;  %s762_s10 = scalar_lea.sflag [#allocation5], %s752_s8 }
 0x112   : > { %1112 = dma.done.wait (%p975_p5), %s762_s10, 256  }
 0x113   : > { %1114 = vsyncadd (%p975_p5), %s762_s10, 4294967040  ;;  %s22_s23 = sadd.s32 1, %s1137_s23   ;;  %s1362_s18 = smov %s1121_s19 }
 0x114   : > { %p19_p6 = scmp.ge.s32.totalorder %s22_s23, 5   ;;  %s1363_s19 = smov %s1125_s20 }
 0x115   : > { %s1364_s20 = smov %s1226_s6  ;;  %s1365_s21 = smov %s1133_s22 }
 0x116   : > { %s1366_s22 = smov %s1368_s26  ;;  %21 = sbr.rel (!%p19_p6) target bundleno = 6 (0x6), region = 97 }
 0x11b   :  { %767 = vsyncpa [#allocation3], 1 }
 0x11c   :  { %769 = vsyncpa [#allocation3 + $0x1], 1 }
 0x11d   :  { %770 = vsyncpa [#allocation5], 1 }
 0x11e   :  { %772 = vsyncpa [#allocation5 + $0x1], 1 }

</bundles_post_ra>
